<compile_context>
chip_gen: v7x
topology: tpu7x:2x2x1
jax: 0.10.0
libtpu: 0.0.40
codegen_flags: <defaults>
</compile_context>

<pallas_src>
import functools

import jax
import jax.numpy as jnp
from jax.experimental import pallas as pl
from jax.experimental.pallas import tpu as pltpu


def _focal_loss_kernel(logits_ref, targets_ref, out_ref, acc_ref, *,
                       alpha, gamma, n_valid, tiles_per_split, tile_rows):
    pi = pl.program_id(0)          # parallel split (a TensorCore on multi-TC chips)
    j = pl.program_id(1)           # reduction step over row tiles

    @pl.when(j == 0)
    def _():
        acc_ref[...] = jnp.zeros_like(acc_ref)

    x = logits_ref[...]            # (TN, C), input dtype
    t = targets_ref[...]           # (TN, 1) int32
    tn, c = x.shape

    # Row max + one-hot gather of the target logit, in the input dtype (exact:
    # max/select never round). Gather from raw x so the max-shifted copy only
    # feeds the exp/lse pass below (one less (TN, C) f32 live temp).
    m = jnp.max(x, axis=-1, keepdims=True)                        # (TN, 1)
    cls_ids = jax.lax.broadcasted_iota(jnp.int32, (tn, c), 1)     # (TN, C)
    onehot = cls_ids == t                                         # (TN, C) bool
    logit_t = jnp.sum(jnp.where(onehot, x, 0), axis=-1, keepdims=True)

    # Numerically stable log-sum-exp / cross-entropy in f32.
    mf = m.astype(jnp.float32)
    z = x.astype(jnp.float32) - mf                                # (TN, C)
    lse = jnp.log(jnp.sum(jnp.exp(z), axis=-1, keepdims=True))    # (TN, 1), rel. to mf
    shifted_t = logit_t.astype(jnp.float32) - mf                  # (TN, 1)

    ce = lse - shifted_t                                          # per-sample CE
    pt = jnp.exp(shifted_t - lse)                                 # exp(-ce)
    one_minus_pt = jnp.maximum(1.0 - pt, 0.0)   # guard pt > 1 rounding (non-int gamma)

    # Static-gamma specialization: small integer gamma -> repeated VPU
    # multiplies (jnp.power with a float exponent costs 2 EUP transcendentals).
    if float(gamma) == int(gamma) and 0 <= int(gamma) <= 4:
        g = int(gamma)
        w = jnp.ones_like(one_minus_pt) if g == 0 else one_minus_pt
        for _ in range(max(g - 1, 0)):
            w = w * one_minus_pt
    else:
        w = jnp.power(one_minus_pt, gamma)

    focal = alpha * w * ce                                        # (TN, 1)

    # Mask rows whose global index is >= N: the ragged last tile and any
    # duplicated (clamped) tile of the final split contribute exactly 0; the
    # select also kills NaN/Inf coming from garbage rows of edge blocks.
    row = jax.lax.broadcasted_iota(jnp.int32, (tn, 1), 0)
    global_row = (pi * tiles_per_split + j) * tile_rows + row
    focal = jnp.where(global_row < n_valid, focal, 0.0)

    # Tiny (1, 1) accumulator; the output block is written once, at the end.
    acc_ref[...] += jnp.sum(focal, axis=0, keepdims=True)

    @pl.when(j == pl.num_programs(1) - 1)
    def _():
        out_ref[0] = acc_ref[...]


def _vmem_capacity_bytes():
    try:
        return int(pltpu.get_tpu_info().vmem_capacity_bytes)
    except Exception:
        return 64 * 1024 * 1024          # conservative (v7x-sized) fallback


def _default_num_splits():
    # A 2-way leading split only pays off where there is a second TensorCore to
    # feed (v7x). On single-TC chips (v5e/v6e) it is just a serial loop that
    # shrinks tiles and doubles per-step overhead.
    try:
        kind = jax.devices()[0].device_kind.lower()
    except Exception:
        return 1
    return 2 if ("v7" in kind or "7x" in kind) else 1


def _choose_tile_rows(c, in_bytes, budget_bytes):
    """Largest row-tile whose working set fits the per-chip VMEM budget."""
    # 2x double-buffered logits blocks, 2x lane-padded (TN, 128) int32 targets
    # blocks, plus ~4 (TN, C) f32 temps (upcast, exp, select, ...) Mosaic may
    # materialize.
    per_row = 2 * c * in_bytes + 2 * 128 * 4 + 4 * c * 4
    tn = int(budget_bytes // per_row)
    return max(8, min(1024, (tn // 8) * 8))


def focal_loss(logits, targets, alpha=0.25, gamma=2.0, num_splits=None,
               max_tile_rows=None):
    """logits: (N, C) float (f32/bf16), targets: (N,) int -> scalar f32 loss."""
    n, c = logits.shape
    in_bytes = jnp.dtype(logits.dtype).itemsize

    vmem_cap = _vmem_capacity_bytes()
    tile_budget = (vmem_cap * 3) // 8        # ~24 MiB on v7x, ~48 MiB on v5e/v6e
    vmem_limit = vmem_cap // 2               # ~32 MiB on v7x, ~64 MiB on v5e/v6e

    p = _default_num_splits() if num_splits is None else max(1, int(num_splits))

    tn = _choose_tile_rows(c, in_bytes, tile_budget)
    if max_tile_rows is not None:
        tn = max(8, min(tn, (int(max_tile_rows) // 8) * 8))
    # Never make a tile bigger than one split's worth of rows.
    tn = min(tn, max(8, ((pl.cdiv(n, p) + 7) // 8) * 8))

    tiles_total = pl.cdiv(n, tn)
    p = max(1, min(p, tiles_total))          # no completely empty splits
    tiles_per_split = pl.cdiv(tiles_total, p)

    # No jnp.pad of logits/targets: the grid covers ceil(N / tn) row blocks; the
    # ragged last block (and any clamped duplicate block of the final split) is
    # masked inside the kernel.
    targets_col = targets.astype(jnp.int32).reshape(n, 1)

    def row_block(pi, j):
        # Clamp so a logically-out-of-range tile of the last split re-reads the
        # final valid tile instead of issuing an out-of-bounds DMA; its rows are
        # fully masked by `global_row < n_valid`.
        return (jnp.minimum(pi * tiles_per_split + j, tiles_total - 1), 0)

    kernel = functools.partial(
        _focal_loss_kernel,
        alpha=float(alpha), gamma=float(gamma),
        n_valid=n, tiles_per_split=tiles_per_split, tile_rows=tn)

    out = pl.pallas_call(
        kernel,
        out_shape=jax.ShapeDtypeStruct((p, 1, 1), jnp.float32),
        grid_spec=pltpu.PrefetchScalarGridSpec(
            num_scalar_prefetch=0,
            grid=(p, tiles_per_split),
            in_specs=[
                pl.BlockSpec((tn, c), row_block),
                pl.BlockSpec((tn, 1), row_block),
            ],
            out_specs=pl.BlockSpec((1, 1, 1), lambda pi, j: (pi, 0, 0)),
            scratch_shapes=[pltpu.VMEM((1, 1), jnp.float32)],
        ),
        compiler_params=pltpu.CompilerParams(
            dimension_semantics=("parallel", "arbitrary"),
            vmem_limit_bytes=vmem_limit,
        ),
    )(logits, targets_col)

    # One raw partial sum per split; mean over the real batch size.
    return jnp.sum(out[:, 0, 0]) / n


def _focal_loss_ref(logits, targets, alpha=0.25, gamma=2.0):
    # Pure-JAX reference (mirrors torch cross_entropy(reduction='none') + focal).
    logp = jax.nn.log_softmax(logits.astype(jnp.float32), axis=-1)
    ce = -jnp.take_along_axis(logp, targets[:, None].astype(jnp.int32), axis=-1)[:, 0]
    pt = jnp.exp(-ce)
    return jnp.mean(alpha * (1.0 - pt) ** gamma * ce)


if __name__ == "__main__":
    key = jax.random.PRNGKey(0)
    k1, k2 = jax.random.split(key)

    N, C = 38, 32                     # small batch; exercises the ragged last tile
    ALPHA, GAMMA = 0.25, 2.0          # deterministic "parameters" from __init__

    logits = jax.random.normal(k1, (N, C), dtype=jnp.float32)
    targets = jax.random.randint(k2, (N,), 0, C, dtype=jnp.int32)

    ref = _focal_loss_ref(logits, targets, alpha=ALPHA, gamma=GAMMA)

    # 1) Default (chip-auto) configuration.
    loss = jax.block_until_ready(focal_loss(logits, targets, alpha=ALPHA, gamma=GAMMA))
    assert jnp.allclose(loss, ref, rtol=1e-5, atol=1e-6), (loss, ref)

    # 2) Forced tiny tiles + 2-way split: exercises multi-step accumulation, the
    #    ragged last tile, and a clamped (fully masked) tile in the second split.
    loss2 = jax.block_until_ready(
        focal_loss(logits, targets, alpha=ALPHA, gamma=GAMMA,
                   num_splits=2, max_tile_rows=8))
    assert jnp.allclose(loss2, ref, rtol=1e-5, atol=1e-6), (loss2, ref)

    print("KERNEL_OK")
</pallas_src>

<mosaic_0001>
module attributes {stable_mosaic.version = 11 : i64} {
  func.func @_focal_loss_kernel(%arg0: i32, %arg1: i32, %arg2: memref<40x32xf32, #tpu.memory_space<vmem>>, %arg3: memref<40x1xi32, #tpu.memory_space<vmem>>, %arg4: memref<1x1x1xf32, #tpu.memory_space<vmem>>, %arg5: memref<1x1xf32, #tpu.memory_space<vmem>>) attributes {dimension_semantics = [#tpu.dimension_semantics<parallel>, #tpu.dimension_semantics<arbitrary>], iteration_bounds = array<i64: 1, 1>, scalar_prefetch = 0 : i64, scratch_operands = 1 : i64, tpu.core_type = #tpu.core_type<tc>, window_params = [{transform_indices = @transform_0, window_bounds = array<i64: 40, 32>}, {transform_indices = @transform_1, window_bounds = array<i64: 40, 1>}, {transform_indices = @transform_2, window_bounds = array<i64: 1, 1, 1>}]} {
    %c0_i32 = arith.constant 0 : i32
    %0 = arith.cmpi eq, %arg1, %c0_i32 : i32
    %1 = arith.extui %0 : i1 to i32
    %c0_i32_0 = arith.constant 0 : i32
    %2 = arith.cmpi ne, %1, %c0_i32_0 : i32
    scf.if %2 {
      %cst_18 = arith.constant 0.000000e+00 : f32
      %51 = vector.broadcast %cst_18 : f32 to vector<1x1xf32>
      %c0_19 = arith.constant 0 : index
      %c0_20 = arith.constant 0 : index
      %52 = vector.load %arg5[%c0_19, %c0_20] : memref<1x1xf32, #tpu.memory_space<vmem>>, vector<1x1xf32>
      tpu.vector_store %arg5[%c0_19, %c0_20], %51 {strides = array<i32>} : memref<1x1xf32, #tpu.memory_space<vmem>>, vector<1x1xf32>,
    } else {
    }
    %c0 = arith.constant 0 : index
    %c0_1 = arith.constant 0 : index
    %3 = vector.load %arg2[%c0, %c0_1] : memref<40x32xf32, #tpu.memory_space<vmem>>, vector<40x32xf32>
    %c0_2 = arith.constant 0 : index
    %c0_3 = arith.constant 0 : index
    %4 = vector.load %arg3[%c0_2, %c0_3] : memref<40x1xi32, #tpu.memory_space<vmem>>, vector<40x1xi32>
    %cst = arith.constant dense<0xFF800000> : vector<40xf32>
    %5 = vector.multi_reduction <maximumf>, %3, %cst [1] : vector<40x32xf32> to vector<40xf32>
    %6 = vector.shape_cast %5 : vector<40xf32> to vector<40x1xf32>
    %7 = tpu.iota {dimensions = array<i32: 1>} : vector<40x32xi32>
    %8 = vector.broadcast %4 : vector<40x1xi32> to vector<40x32xi32>
    %9 = arith.cmpi eq, %7, %8 : vector<40x32xi32>
    %c0_i32_4 = arith.constant 0 : i32
    %10 = arith.sitofp %c0_i32_4 : i32 to f32
    %11 = vector.broadcast %10 : f32 to vector<40x32xf32>
    %12 = arith.select %9, %3, %11 : vector<40x32xi1>, vector<40x32xf32>
    %cst_5 = arith.constant dense<0.000000e+00> : vector<40xf32>
    %13 = vector.multi_reduction <add>, %12, %cst_5 [1] : vector<40x32xf32> to vector<40xf32>
    %14 = vector.shape_cast %13 : vector<40xf32> to vector<40x1xf32>
    %15 = vector.broadcast %6 : vector<40x1xf32> to vector<40x32xf32>
    %16 = arith.subf %3, %15 : vector<40x32xf32>
    %17 = math.exp %16 : vector<40x32xf32>
    %cst_6 = arith.constant dense<0.000000e+00> : vector<40xf32>
    %18 = vector.multi_reduction <add>, %17, %cst_6 [1] : vector<40x32xf32> to vector<40xf32>
    %19 = vector.shape_cast %18 : vector<40xf32> to vector<40x1xf32>
    %20 = math.log %19 : vector<40x1xf32>
    %21 = arith.subf %14, %6 : vector<40x1xf32>
    %22 = arith.subf %20, %21 : vector<40x1xf32>
    %23 = arith.subf %21, %20 : vector<40x1xf32>
    %24 = math.exp %23 : vector<40x1xf32>
    %cst_7 = arith.constant 1.000000e+00 : f32
    %25 = vector.broadcast %cst_7 : f32 to vector<40x1xf32>
    %26 = arith.subf %25, %24 : vector<40x1xf32>
    %cst_8 = arith.constant 0.000000e+00 : f32
    %27 = vector.broadcast %cst_8 : f32 to vector<40x1xf32>
    %28 = arith.maximumf %26, %27 : vector<40x1xf32>
    %29 = arith.mulf %28, %28 : vector<40x1xf32>
    %cst_9 = arith.constant 2.500000e-01 : f32
    %30 = vector.broadcast %cst_9 : f32 to vector<40x1xf32>
    %31 = arith.mulf %30, %29 : vector<40x1xf32>
    %32 = arith.mulf %31, %22 : vector<40x1xf32>
    %33 = tpu.iota {dimensions = array<i32: 0>} : vector<40x1xi32>
    %c1_i32 = arith.constant 1 : i32
    %34 = arith.muli %arg0, %c1_i32 : i32
    %35 = arith.addi %34, %arg1 : i32
    %c40_i32 = arith.constant 40 : i32
    %36 = arith.muli %35, %c40_i32 : i32
    %37 = vector.broadcast %36 : i32 to vector<40x1xi32>
    %38 = arith.addi %37, %33 : vector<40x1xi32>
    %c38_i32 = arith.constant 38 : i32
    %39 = vector.broadcast %c38_i32 : i32 to vector<40x1xi32>
    %40 = arith.cmpi slt, %38, %39 : vector<40x1xi32>
    %cst_10 = arith.constant 0.000000e+00 : f32
    %41 = vector.broadcast %cst_10 : f32 to vector<40x1xf32>
    %42 = arith.select %40, %32, %41 : vector<40x1xi1>, vector<40x1xf32>
    %c0_11 = arith.constant 0 : index
    %c0_12 = arith.constant 0 : index
    %43 = vector.load %arg5[%c0_11, %c0_12] : memref<1x1xf32, #tpu.memory_space<vmem>>, vector<1x1xf32>
    %cst_13 = arith.constant dense<0.000000e+00> : vector<1xf32>
    %44 = vector.multi_reduction <add>, %42, %cst_13 [0] : vector<40x1xf32> to vector<1xf32>
    %45 = vector.shape_cast %44 : vector<1xf32> to vector<1x1xf32>
    %46 = arith.addf %43, %45 : vector<1x1xf32>
    %c0_14 = arith.constant 0 : index
    %c0_15 = arith.constant 0 : index
    %47 = vector.load %arg5[%c0_14, %c0_15] : memref<1x1xf32, #tpu.memory_space<vmem>>, vector<1x1xf32>
    tpu.vector_store %arg5[%c0_14, %c0_15], %46 {strides = array<i32>} : memref<1x1xf32, #tpu.memory_space<vmem>>, vector<1x1xf32>,
    %c0_i32_16 = arith.constant 0 : i32
    %48 = arith.cmpi eq, %arg1, %c0_i32_16 : i32
    %49 = arith.extui %48 : i1 to i32
    %c0_i32_17 = arith.constant 0 : i32
    %50 = arith.cmpi ne, %49, %c0_i32_17 : i32
    scf.if %50 {
      %c0_18 = arith.constant 0 : index
      %c0_19 = arith.constant 0 : index
      %51 = vector.load %arg5[%c0_18, %c0_19] : memref<1x1xf32, #tpu.memory_space<vmem>>, vector<1x1xf32>
      %c0_20 = arith.constant 0 : index
      %c0_21 = arith.constant 0 : index
      %c0_22 = arith.constant 0 : index
      %52 = vector.load %arg4[%c0_20, %c0_21, %c0_22] : memref<1x1x1xf32, #tpu.memory_space<vmem>>, vector<1x1x1xf32>
      %53 = vector.shape_cast %52 : vector<1x1x1xf32> to vector<1x1xf32>
      %54 = vector.shape_cast %51 : vector<1x1xf32> to vector<1x1x1xf32>
      tpu.vector_store %arg4[%c0_20, %c0_21, %c0_22], %54 {strides = array<i32>} : memref<1x1x1xf32, #tpu.memory_space<vmem>>, vector<1x1x1xf32>,
    } else {
    }
    return
  }
  func.func @transform_0(%arg0: i32, %arg1: i32) -> (i32, i32) {
    %c1_i32 = arith.constant 1 : i32
    %0 = arith.muli %arg0, %c1_i32 : i32
    %1 = arith.addi %0, %arg1 : i32
    %c0_i32 = arith.constant 0 : i32
    %2 = arith.minsi %1, %c0_i32 : i32
    %c0_i32_0 = arith.constant 0 : i32
    %c0_i32_1 = arith.constant 0 : i32
    return %2, %c0_i32_0 : i32, i32
  }
  func.func @transform_1(%arg0: i32, %arg1: i32) -> (i32, i32) {
    %c1_i32 = arith.constant 1 : i32
    %0 = arith.muli %arg0, %c1_i32 : i32
    %1 = arith.addi %0, %arg1 : i32
    %c0_i32 = arith.constant 0 : i32
    %2 = arith.minsi %1, %c0_i32 : i32
    %c0_i32_0 = arith.constant 0 : i32
    %c0_i32_1 = arith.constant 0 : i32
    return %2, %c0_i32_0 : i32, i32
  }
  func.func @transform_2(%arg0: i32, %arg1: i32) -> (i32, i32, i32) {
    %c0_i32 = arith.constant 0 : i32
    %c0_i32_0 = arith.constant 0 : i32
    %c0_i32_1 = arith.constant 0 : i32
    return %arg0, %c0_i32, %c0_i32_0 : i32, i32, i32
  }
}

</mosaic_0001>

<bundles_post_ra>
// kernel: tpu_custom_call.1
= control target key start
LH: loop header
LB: loop body
LE: loop exit
PB: predicated region body
PF: predicated region fallthrough
CT: control target
= control target key end

     0   :  { %vm92_vm0 = vcmask 261120   ;;  %v368_v6 = vmov 0   ;;  %s488_s0 = inlined_call_operand.vmem [shape: f32[38,32], index: 0, kind: input, shape index: {}]   ;;  %s489_s1 = inlined_call_operand.vmem [shape: s32[38,1], index: 1, kind: input, shape index: {}]   ;;  %s490_s2 = inlined_call_operand.hbm [shape: f32[1,1,1], index: 2, kind: output, shape index: {}]  }
   0x1   :  { %v389_v0 = vld [vmem:[%s488_s0] sm:$0xff]  ;;  %v394_v1 = vld [vmem:[%s488_s0 + $0x10] sm:$0xff]  ;;  %v83_v2 = vld [vmem:[%s488_s0 + $0x8] sm:$0xff]  ;;  %312 = vset.pattern.permute.xlu1 %v368_v6  ;;  %313 = vset.pattern.permute.xlu0 %v368_v6 }
   0x2   :  { %v93_v3 = vsel %vm92_vm0, %v389_v0, -inf  ;;  %v99_v4 = vsel %vm92_vm0, %v394_v1, -inf  ;;  %v406_v5 = vld [vmem:[%s488_s0 + $0x18] sm:$0xff]  ;;  %v96_v7 = vsel %vm92_vm0, %v83_v2, -inf }
   0x3   :  { %94 = vmax.xlane.f32.xlu0 %v93_v3  ;;  %100 = vmax.xlane.f32.xlu1 %v99_v4  ;;  %v102_v8 = vsel %vm92_vm0, %v406_v5, -inf }
   0x4   :  { %7 = vsyncpa [#allocation4], 0  ;;  %v414_v9 = vld [vmem:[%s488_s0 + $0x20] sm:$0xff]  ;;  %v89_v12 = vld [vmem:[%s489_s1 + $0x10] sm:$0xff]  ;;  %v108_v31 = vlaneseq  ;;  %vm80_vm6 = vcmask 0   ;;  %v369_v58 = vmov 0.0  }
   0x5   :  { %v105_v10 = vsel %vm92_vm0, %v414_v9, -inf  ;;  %v87_v11 = vld [vmem:[%s489_s1] sm:$0xff]  ;;  %v90_v13 = vld [vmem:[%s489_s1 + $0x18] sm:$0xff]  ;;  %v88_v14 = vld [vmem:[%s489_s1 + $0x8] sm:$0xff]  ;;  %81 = vst.msk [vmem:[#allocation2] sm:$0x1] %vm80_vm6, %v369_v58 }
   0x6   :  { %v91_v15 = vld [vmem:[%s489_s1 + $0x20] sm:$0xff]  ;;  %v109_v33 = vand.u32 127, %v108_v31  ;;  %s370_s1 = smov [#allocation3]  }
   0x7   :  { %97 = vmax.xlane.f32.xlu0 %v96_v7  ;;  %103 = vmax.xlane.f32.xlu1 %v102_v8  ;;  %s289_s28 = sshll.u32 %s370_s1, 4  ;;  %s290_s28 = int_to_ptr.vmem [resolvable:$true] %s289_s28 }
   0x8   :  { %s344_s29 = scalar_lea.vmem %s290_s28, 16  ;;  %s348_s30 = scalar_lea.vmem %s290_s28, 32 }
   0x9   :  { %p345_p0 = scmp.ne.s32.totalorder %s290_s28, %s344_s29  ;;  %p349_p1 = scmp.lt.s32.totalorder %s290_s28, %s290_s28 }
   0xa   :  { %p350_p2 = scmp.lt.s32.totalorder %s348_s30, %s344_s29 }
   0xb   :  { %106 = vmax.xlane.f32.xlu0 %v105_v10 }
   0xc   :  { %p351_p3 = por %p350_p2, %p349_p1 }
   0xe   :  { %p352_p4 = pnand %p351_p3, %p345_p0 }
  0x18   :  { %111 = vperm.xlu1 %312, %v87_v11  }
  0x1c   :  { %117 = vperm.xlu1 %312, %v89_v12  }
  0x20   :  { %120 = vperm.xlu1 %312, %v90_v13  }
  0x21   :  { %114 = vperm.xlu0 %313, %v88_v14  }
  0x24   :  { %123 = vperm.xlu1 %312, %v91_v15  }
  0x90   :  { %v433_v16 = vpop.xlane.xlu0 %94  ;;  %v435_v17 = vpop.xlane.xlu1 %100 }
  0x91   :  { %v150_v18 = vsub.f32 %v389_v0, %v433_v16  ;;  %v152_v19 = vsub.f32 %v394_v1, %v435_v17 }
  0x93   :  { %v155_v20 = vmul.f32 1.442695, %v150_v18  ;;  %v159_v21 = vmul.f32 1.442695, %v152_v19 }
  0x94   :  { %v441_v22 = vpop.xlane.xlu0 %97  ;;  %v443_v23 = vpop.xlane.xlu1 %103 }
  0x95   :  { %314 = vpow2.f32 %v155_v20  ;;  %v151_v24 = vsub.f32 %v83_v2, %v441_v22  ;;  %v153_v25 = vsub.f32 %v406_v5, %v443_v23 }
  0x96   :  { %316 = vpow2.f32 %v159_v21 }
  0x97   :  { %v157_v26 = vmul.f32 1.442695, %v151_v24  ;;  %v161_v27 = vmul.f32 1.442695, %v153_v25 }
  0x98   :  { %v448_v28 = vpop.xlane.xlu0 %106  ;;  %v112_v29 = vpop.permute.xlu1 %111 }
  0x99   :  { %318 = vpow2.f32 %v157_v26  ;;  %v154_v30 = vsub.f32 %v414_v9, %v448_v28  ;;  %vm125_vm3 = vcmp.eq.s32.totalorder %v109_v33, %v112_v29 }
  0x9a   :  { %320 = vpow2.f32 %v161_v27  ;;  %v130_v51 = vsel %vm125_vm3, %v389_v0, 0.0 }
  0x9b   :  { %v163_v32 = vmul.f32 1.442695, %v154_v30  ;;  %v135_v53 = vsel %vm92_vm0, %v130_v51, 0.0  ;;  %v241_v51 = vshrl.u32 %v108_v31, 7 }
  0x9c   :  { %v118_v34 = vpop.permute.xlu1 %117 }
  0x9d   :  { %322 = vpow2.f32 %v163_v32  ;;  %vm127_vm4 = vcmp.eq.s32.totalorder %v109_v33, %v118_v34 }
  0x9e   :  { %v132_v54 = vsel %vm127_vm4, %v394_v1, 0.0 }
  0x9f   :  { %v315_v35 = vpop.eup %314  ;;  %v141_v55 = vsel %vm92_vm0, %v132_v54, 0.0 }
  0xa0   :  { %v317_v36 = vpop.eup %316  ;;  %v165_v37 = vsel %vm92_vm0, %v315_v35, 0.0  ;;  %v115_v38 = vpop.permute.xlu0 %114 }
  0xa1   :  { %166 = vadd.xlane.f32.xlu1 %v165_v37  ;;  %vm126_vm1 = vcmp.eq.s32.totalorder %v109_v33, %v115_v38  ;;  %v171_v39 = vsel %vm92_vm0, %v317_v36, 0.0  ;;  %v121_v41 = vpop.permute.xlu1 %120 }
  0xa2   :  { %v131_v42 = vsel %vm126_vm1, %v83_v2, 0.0  ;;  %vm128_vm2 = vcmp.eq.s32.totalorder %v109_v33, %v121_v41 }
  0xa3   :  { %v319_v40 = vpop.eup %318  ;;  %v138_v46 = vsel %vm92_vm0, %v131_v42, 0.0  ;;  %v133_v48 = vsel %vm128_vm2, %v406_v5, 0.0 }
  0xa4   :  { %v321_v43 = vpop.eup %320  ;;  %v168_v44 = vsel %vm92_vm0, %v319_v40, 0.0  ;;  %v144_v50 = vsel %vm92_vm0, %v133_v48, 0.0 }
  0xa5   :  { %172 = vadd.xlane.f32.xlu1 %v171_v39  ;;  %169 = vadd.xlane.f32.xlu0 %v168_v44  ;;  %v174_v45 = vsel %vm92_vm0, %v321_v43, 0.0  ;;  %v124_v52 = vpop.permute.xlu1 %123 }
  0xa6   :  { %vm129_vm5 = vcmp.eq.s32.totalorder %v109_v33, %v124_v52 }
  0xa7   :  { %v323_v47 = vpop.eup %322  ;;  %v134_v56 = vsel %vm129_vm5, %v414_v9, 0.0 }
  0xa8   :  { %v177_v49 = vsel %vm92_vm0, %v323_v47, 0.0  ;;  %v147_v57 = vsel %vm92_vm0, %v134_v56, 0.0 }
  0xa9   :  { %175 = vadd.xlane.f32.xlu1 %v174_v45  ;;  %139 = vadd.xlane.f32.xlu0 %v138_v46 }
  0xad   :  { %178 = vadd.xlane.f32.xlu1 %v177_v49  ;;  %145 = vadd.xlane.f32.xlu0 %v144_v50 }
  0xb1   :  { %136 = vadd.xlane.f32.xlu1 %v135_v53 }
  0xb5   :  { %142 = vadd.xlane.f32.xlu1 %v141_v55 }
  0xb9   :  { %148 = vadd.xlane.f32.xlu1 %v147_v57 }
 0x12e   :  { %v167_v59 = vpop.xlane.xlu1 %166 }
 0x12f   :  { %324 = vlog2.f32 %v167_v59 }
 0x132   :  { %v173_v60 = vpop.xlane.xlu1 %172  ;;  %v170_v61 = vpop.xlane.xlu0 %169 }
 0x133   :  { %326 = vlog2.f32 %v170_v61 }
 0x134   :  { %328 = vlog2.f32 %v173_v60  ;;  %v245_v60 = vadd.s32 32, %v241_v51 }
 0x136   :  { %v176_v62 = vpop.xlane.xlu1 %175  ;;  %v140_v63 = vpop.xlane.xlu0 %139  ;;  %vm258_vm7 = vcmp.lt.s32.totalorder %v245_v60, 38 }
 0x137   :  { %330 = vlog2.f32 %v176_v62  ;;  %v191_v6 = vsub.f32 %v140_v63, %v441_v22 }
 0x139   :  { %v325_v1 = vpop.eup %324 }
 0x13a   :  { %v179_v0 = vpop.xlane.xlu1 %178  ;;  %v181_v4 = vmul.f32 0.6931472, %v325_v1  ;;  %v146_v7 = vpop.xlane.xlu0 %145 }
 0x13b   :  { %332 = vlog2.f32 %v179_v0  ;;  %v193_v14 = vsub.f32 %v146_v7, %v443_v23 }
 0x13d   :  { %v327_v2 = vpop.eup %326 }
 0x13e   :  { %v137_v3 = vpop.xlane.xlu1 %136  ;;  %v183_v5 = vmul.f32 0.6931472, %v327_v2  ;;  %v329_v9 = vpop.eup %328 }
 0x13f   :  { %v190_v8 = vsub.f32 %v137_v3, %v433_v16  ;;  %v185_v18 = vmul.f32 0.6931472, %v329_v9 }
 0x140   :  { %v201_v11 = vsub.f32 %v191_v6, %v183_v5  ;;  %v196_v45 = vsub.f32 %v183_v5, %v191_v6 }
 0x141   :  { %v331_v10 = vpop.eup %330  ;;  %v200_v12 = vsub.f32 %v190_v8, %v181_v4  ;;  %v195_v49 = vsub.f32 %v181_v4, %v190_v8 }
 0x142   :  { %v187_v13 = vmul.f32 0.6931472, %v331_v10  ;;  %v143_v15 = vpop.xlane.xlu1 %142  ;;  %v207_v19 = vmul.f32 1.442695, %v201_v11 }
 0x143   :  { %v205_v20 = vmul.f32 1.442695, %v200_v12  ;;  %v192_v21 = vsub.f32 %v143_v15, %v435_v17  ;;  %v264_v15 = vld [vmem:[#allocation2] sm:$0x1] }
 0x144   :  { %v203_v24 = vsub.f32 %v193_v14, %v187_v13  ;;  %334 = vpow2.f32 %v207_v19  ;;  %v198_v61 = vsub.f32 %v187_v13, %v193_v14 }
 0x145   :  { %v333_v25 = vpop.eup %332  ;;  %v202_v22 = vsub.f32 %v192_v21, %v185_v18  ;;  %336 = vpow2.f32 %v205_v20  ;;  %v197_v57 = vsub.f32 %v185_v18, %v192_v21 }
 0x146   :  { %v189_v26 = vmul.f32 0.6931472, %v333_v25  ;;  %v211_v27 = vmul.f32 1.442695, %v203_v24  ;;  %v149_v16 = vpop.xlane.xlu1 %148 }
 0x147   :  { %v209_v29 = vmul.f32 1.442695, %v202_v22  ;;  %v194_v30 = vsub.f32 %v149_v16, %v448_v28 }
 0x148   :  { %338 = vpow2.f32 %v211_v27 }
 0x149   :  { %340 = vpow2.f32 %v209_v29  ;;  %v204_v23 = vsub.f32 %v194_v30, %v189_v26  ;;  %v199_v3 = vsub.f32 %v189_v26, %v194_v30 }
 0x14b   :  { %v213_v32 = vmul.f32 1.442695, %v204_v23 }
 0x14d   :  { %342 = vpow2.f32 %v213_v32 }
 0x14e   :  { %v335_v33 = vpop.eup %334 }
 0x14f   :  { %v337_v34 = vpop.eup %336  ;;  %v216_v35 = vsub.f32 1.0, %v335_v33 }
 0x150   :  { %v215_v17 = vsub.f32 1.0, %v337_v34 }
 0x151   :  { %v221_v37 = vmax.f32 %v216_v35, 0.0 }
 0x152   :  { %v339_v36 = vpop.eup %338  ;;  %v220_v40 = vmax.f32 %v215_v17, 0.0 }
 0x153   :  { %v341_v38 = vpop.eup %340  ;;  %v218_v39 = vsub.f32 1.0, %v339_v36  ;;  %v226_v41 = vmul.f32 %v221_v37, %v221_v37 }
 0x154   :  { %v217_v42 = vsub.f32 1.0, %v341_v38  ;;  %v225_v44 = vmul.f32 %v220_v40, %v220_v40 }
 0x155   :  { %v223_v43 = vmax.f32 %v218_v39, 0.0  ;;  %v231_v28 = vmul.f32 0.25, %v226_v41 }
 0x156   :  { %v222_v46 = vmax.f32 %v217_v42, 0.0  ;;  %v230_v50 = vmul.f32 0.25, %v225_v44 }
 0x157   :  { %v343_v47 = vpop.eup %342  ;;  %v228_v48 = vmul.f32 %v223_v43, %v223_v43  ;;  %v236_v52 = vmul.f32 %v231_v28, %v196_v45 }
 0x158   :  { %v227_v53 = vmul.f32 %v222_v46, %v222_v46  ;;  %v219_v54 = vsub.f32 1.0, %v343_v47  ;;  %v235_v55 = vmul.f32 %v230_v50, %v195_v49 }
 0x159   :  { %v233_v56 = vmul.f32 0.25, %v228_v48 }
 0x15a   :  { %v232_v58 = vmul.f32 0.25, %v227_v53  ;;  %v224_v59 = vmax.f32 %v219_v54, 0.0  ;;  %v265_v62 = vadd.f32 %v236_v52, %v235_v55 }
 0x15b   :  { %v238_v1 = vmul.f32 %v233_v56, %v198_v61 }
 0x15c   :  { %v237_v63 = vmul.f32 %v232_v58, %v197_v57  ;;  %v229_v0 = vmul.f32 %v224_v59, %v224_v59 }
 0x15e   :  { %v266_v2 = vadd.f32 %v265_v62, %v237_v63  ;;  %v234_v4 = vmul.f32 0.25, %v229_v0 }
 0x160   :  { %v267_v5 = vadd.f32 %v266_v2, %v238_v1  ;;  %v239_v31 = vmul.f32 %v234_v4, %v199_v3 }
 0x162   :  { %v263_v6 = vsel %vm258_vm7, %v239_v31, 0.0 }
 0x163   :  { %v268_v7 = vadd.f32 %v267_v5, %v263_v6 }
 0x165   :  { %v269_v8 = vrot.slane %v268_v7, 4 }
 0x167   :  { %v270_v9 = vadd.f32 %v269_v8, %v268_v7 }
 0x169   :  { %v271_v10 = vrot.slane %v270_v9, 2 }
 0x16b   :  { %v272_v11 = vadd.f32 %v271_v10, %v270_v9 }
 0x16d   :  { %v273_v12 = vrot.slane %v272_v11, 1 }
 0x16f   :  { %v274_v18 = vadd.f32 %v273_v12, %v272_v11 }
 0x171   :  { %v275_v13 = vadd.f32 %v274_v18, %v264_v15 }
 0x173   :  { %277 = vst.msk [vmem:[#allocation2] sm:$0x1] %vm80_vm6, %v275_v13 }
 0x17a   :  { %v281_v14 = vld [vmem:[#allocation2] sm:$0x1] }
 0x17b   :  { %282 = vst.msk [vmem:[#allocation3] sm:$0x1] %vm80_vm6, %v281_v14 }
 0x17c   :  { %355 = shalt.err (!%p352_p4)
}
 0x17d   :  { %s356_s5 = scalar_lea.hbm %s490_s2, 16 }
 0x17e   :  { %p357_p5 = scmp.ne.s32.totalorder %s490_s2, %s356_s5  ;;  %p360_p6 = scmp.lt.u32.totalorder %s356_s5, %s490_s2 }
 0x180   :  { %p362_p7 = pnand %p360_p6, %p357_p5 }
 0x182   :  { %365 = shalt.err (!%p362_p7)
}
 0x183   :  { %292 = dma.vmem_to_hbm [thread:$0]  %s290_s28, 16, %s490_s2, [#allocation4]  }
 0x184   :  { %366 = dma.done.wait [#allocation4], 16  }
 0x185   :  { %367 = vsyncadd [#allocation4], 4294967280 }
 0x186   :  { %296 = vsyncpa [#allocation4], 1 }

</bundles_post_ra>
